<compile_context>
chip_gen: v7x
topology: tpu7x:2x2x1
jax: 0.10.0
libtpu: 0.0.40
codegen_flags: <defaults>
</compile_context>

<pallas_src>
import jax
import jax.numpy as jnp
from jax.experimental import pallas as pl
from jax.experimental.pallas import tpu as pltpu


def _make_kernel(K: int, dilation: int, P: int, TL: int, tiled: bool):
    """Kernel body.  The wrapper left-pads the input by P zeros, so output
    column t (global, in [0, P+L_out)) reads padded input columns t + k*d,
    k = 0..K-1; columns t < P are forced to exact zeros (= F.pad on the output).
    """

    def _finish(taps, w_ref, o_ref, tile_j):
        # taps: K arrays of shape (C_in, TL) -> stack along the contraction axis
        # and do a single MXU matmul per tile with f32 accumulation.
        xs = jnp.concatenate(taps, axis=0) if len(taps) > 1 else taps[0]
        y = jnp.dot(w_ref[...], xs, preferred_element_type=jnp.float32)
        if P > 0:
            col = jax.lax.broadcasted_iota(jnp.int32, y.shape, 1) + tile_j * TL
            y = jnp.where(col >= P, y, jnp.zeros_like(y))
        o_ref[...] = y.astype(o_ref.dtype)

    if tiled:
        def kernel(xm_ref, xh_ref, w_ref, o_ref):
            # xm_ref: (C_in, TL) main tile; xh_ref: (C_in, HB) start of the next tile.
            xm = xm_ref[...]
            taps = [xm]
            for k in range(1, K):
                s = k * dilation                       # static shift, s <= halo <= HB
                taps.append(jnp.concatenate([xm[:, s:], xh_ref[:, :s]], axis=1))
            _finish(taps, w_ref, o_ref, pl.program_id(1))
    else:
        def kernel(x_ref, w_ref, o_ref):
            # x_ref: (C_in, TL + halo) == the whole (left-padded) sequence.
            xw = x_ref[...]
            taps = [xw[:, k * dilation:k * dilation + TL] for k in range(K)]
            _finish(taps, w_ref, o_ref, 0)

    return kernel


def caudil_conv1d(x, w_koi, *, dilation: int, causal_padding=None):
    """x: (N, C_in, L); w_koi: (K, C_out, C_in)  (tap-major Conv1d weight).

    Returns (N, C_out, P + L - dilation*(K-1)), P = causal_padding or 0,
    matching CauDilConv1D.forward (stride=1, bias=False, zero left-pad of the
    output time axis).
    """
    N, C_in, L = x.shape
    K, C_out, C_in_w = w_koi.shape
    assert C_in_w == C_in, (w_koi.shape, x.shape)
    halo = dilation * (K - 1)
    L_out = L - halo
    assert L_out > 0, "sequence too short for this kernel_size/dilation"
    P = int(causal_padding) if causal_padding is not None else 0
    assert P >= 0
    T_total = P + L_out
    itemsize = jnp.dtype(x.dtype).itemsize

    # ---- pick the time tile ----------------------------------------------------
    HB = 128 * ((max(halo, 1) + 127) // 128)       # lane-aligned halo fetch width
    TL = max(HB, (512 // HB) * HB)                 # largest multiple of HB <= 512
    tiled = T_total > TL
    if not tiled:
        TL = T_total                               # single-tile path for small seqs

    # ---- lay the input out so every fetch is a fully static, in-bounds block ---
    # Padded column c corresponds to original column c - P.
    if tiled:
        nT = pl.cdiv(T_total, TL)
        pad_right = nT * TL + HB - (P + L)         # >= 0 by construction
    else:
        nT = 1
        pad_right = 0
    if P or pad_right:
        x_p = jnp.pad(x, ((0, 0), (0, 0), (P, pad_right)))
    else:
        x_p = x
    Lp = x_p.shape[-1]

    # Fold the K taps into one contraction: (C_out, K*C_in), k-major columns.
    w_f = jnp.transpose(w_koi, (1, 0, 2)).reshape(C_out, K * C_in)

    kernel = _make_kernel(K, dilation, P, TL, tiled)
    out_shape = jax.ShapeDtypeStruct((N, C_out, T_total), x.dtype)

    if tiled:
        grid = (N, nT)
        in_specs = [
            pl.BlockSpec((pl.Squeezed(), C_in, TL), lambda n, j: (n, 0, j)),
            pl.BlockSpec((pl.Squeezed(), C_in, HB),
                         lambda n, j: (n, 0, (j + 1) * (TL // HB))),
            pl.BlockSpec((C_out, K * C_in), lambda n, j: (0, 0)),
        ]
        out_specs = pl.BlockSpec((pl.Squeezed(), C_out, TL), lambda n, j: (n, 0, j))
        dim_sem = ("parallel", "parallel")
        operands = (x_p, x_p, w_f)
        per_step = (C_in * TL + C_in * HB + C_out * TL) * itemsize
    else:
        grid = (N,)
        in_specs = [
            pl.BlockSpec((pl.Squeezed(), C_in, Lp), lambda n: (n, 0, 0)),
            pl.BlockSpec((C_out, K * C_in), lambda n: (0, 0)),
        ]
        out_specs = pl.BlockSpec((pl.Squeezed(), C_out, T_total), lambda n: (n, 0, 0))
        dim_sem = ("parallel",)
        operands = (x_p, w_f)
        per_step = (C_in * Lp + C_out * T_total) * itemsize

    # double-buffered blocks + weights + headroom for in-kernel intermediates
    scratch_guess = (K + 2) * C_in * TL * 4 + C_out * TL * 4 + C_out * K * C_in * 4
    vmem_limit = int(min(max(2 * per_step + scratch_guess + (2 << 20), 16 << 20),
                         64 << 20))

    cost = pl.CostEstimate(
        flops=int(2 * N * C_out * K * C_in * T_total),
        transcendentals=0,
        bytes_accessed=int((N * C_in * Lp + C_out * K * C_in
                            + N * C_out * T_total) * itemsize),
    )

    return pl.pallas_call(
        kernel,
        out_shape=out_shape,
        grid=grid,
        in_specs=in_specs,
        out_specs=out_specs,
        compiler_params=pltpu.CompilerParams(
            dimension_semantics=dim_sem,
            vmem_limit_bytes=vmem_limit,
        ),
        cost_estimate=cost,
    )(*operands)


def _reference(x, w_koi, dilation, causal_padding):
    """Pure-JAX reference with the same semantics as torch Conv1d + F.pad."""
    w_oik = jnp.transpose(w_koi, (1, 2, 0))                    # (C_out, C_in, K)
    y = jax.lax.conv_general_dilated(
        x, w_oik, window_strides=(1,), padding=((0, 0),),
        rhs_dilation=(dilation,), dimension_numbers=("NCH", "OIH", "NCH"),
        precision=jax.lax.Precision.HIGHEST)
    if causal_padding is not None:
        y = jnp.pad(y, ((0, 0), (0, 0), (causal_padding, 0)))
    return y


if __name__ == "__main__":
    key = jax.random.PRNGKey(0)
    keys = jax.random.split(key, 8)

    def run_case(N, C_in, C_out, L, dilation, causal_padding, k1, k2):
        K = 3                                  # Conv1d kernel_size is hardcoded to 3
        x = jax.random.normal(k1, (N, C_in, L), dtype=jnp.float32)
        w_koi = 0.1 * jax.random.normal(k2, (K, C_out, C_in), dtype=jnp.float32)
        out = jax.block_until_ready(
            caudil_conv1d(x, w_koi, dilation=dilation, causal_padding=causal_padding))
        ref = _reference(x, w_koi, dilation, causal_padding)
        P = causal_padding if causal_padding is not None else 0
        assert out.shape == (N, C_out, P + L - dilation * (K - 1)), out.shape
        err = float(jnp.max(jnp.abs(out - ref)))
        assert jnp.allclose(out, ref, atol=1e-4, rtol=1e-4), err

    # 1) the module's toy config (single-tile fallback path)
    run_case(N=2, C_in=4, C_out=8, L=16, dilation=2, causal_padding=4,
             k1=keys[0], k2=keys[1])
    # 2) tiled path, exact tiles: grid=(2, 2), halo stitched across tile boundary
    run_case(N=2, C_in=8, C_out=16, L=1024, dilation=2, causal_padding=4,
             k1=keys[2], k2=keys[3])
    # 3) no causal padding (P == 0)
    run_case(N=2, C_in=4, C_out=8, L=16, dilation=1, causal_padding=None,
             k1=keys[4], k2=keys[5])
    # 4) tiled path, non-divisible length -> masked partial last output tile
    run_case(N=1, C_in=8, C_out=8, L=901, dilation=3, causal_padding=7,
             k1=keys[6], k2=keys[7])

    print("KERNEL_OK")
</pallas_src>

<mosaic_0001>
module attributes {stable_mosaic.version = 11 : i64} {
  func.func @kernel(%arg0: i32, %arg1: memref<1x4x20xf32, #tpu.memory_space<vmem>>, %arg2: memref<8x12xf32, #tpu.memory_space<vmem>>, %arg3: memref<1x8x16xf32, #tpu.memory_space<vmem>>) attributes {dimension_semantics = [#tpu.dimension_semantics<parallel>], iteration_bounds = array<i64: 2>, scalar_prefetch = 0 : i64, scratch_operands = 0 : i64, tpu.core_type = #tpu.core_type<tc>, window_params = [{transform_indices = @transform_0, window_bounds = array<i64: 1, 4, 20>}, {pipeline_mode = #tpu.pipeline_mode<synchronous>, transform_indices = @transform_1, window_bounds = array<i64: 8, 12>}, {transform_indices = @transform_2, window_bounds = array<i64: 1, 8, 16>}]} {
    %c0 = arith.constant 0 : index
    %c0_0 = arith.constant 0 : index
    %c0_1 = arith.constant 0 : index
    %0 = vector.load %arg1[%c0, %c0_0, %c0_1] : memref<1x4x20xf32, #tpu.memory_space<vmem>>, vector<1x4x20xf32>
    %1 = vector.shape_cast %0 : vector<1x4x20xf32> to vector<4x20xf32>
    %2 = vector.extract_strided_slice %1 {offsets = [0, 0], sizes = [4, 16], strides = [1, 1]} : vector<4x20xf32> to vector<4x16xf32>
    %3 = vector.extract_strided_slice %1 {offsets = [0, 2], sizes = [4, 16], strides = [1, 1]} : vector<4x20xf32> to vector<4x16xf32>
    %4 = vector.extract_strided_slice %1 {offsets = [0, 4], sizes = [4, 16], strides = [1, 1]} : vector<4x20xf32> to vector<4x16xf32>
    %5 = tpu.concatenate %2, %3, %4 in 0 : vector<4x16xf32>, vector<4x16xf32>, vector<4x16xf32> -> vector<12x16xf32>
    %c0_2 = arith.constant 0 : index
    %c0_3 = arith.constant 0 : index
    %6 = vector.load %arg2[%c0_2, %c0_3] : memref<8x12xf32, #tpu.memory_space<vmem>>, vector<8x12xf32>
    %cst = arith.constant dense<0.000000e+00> : vector<8x16xf32>
    %7 = tpu.matmul %6, %5, %cst {dimension_numbers = #tpu.dot_dimension_numbers<[1], [0], [0], [1], [0, 0, 1, 1], [], []>} : vector<8x12xf32>, vector<12x16xf32>, vector<8x16xf32> -> vector<8x16xf32>
    %8 = tpu.iota {dimensions = array<i32: 1>} : vector<8x16xi32>
    %c0_i32 = arith.constant 0 : i32
    %9 = vector.broadcast %c0_i32 : i32 to vector<8x16xi32>
    %10 = arith.addi %8, %9 : vector<8x16xi32>
    %c4_i32 = arith.constant 4 : i32
    %11 = vector.broadcast %c4_i32 : i32 to vector<8x16xi32>
    %12 = arith.cmpi sge, %10, %11 : vector<8x16xi32>
    %cst_4 = arith.constant 0.000000e+00 : f32
    %13 = vector.broadcast %cst_4 : f32 to vector<8x16xf32>
    %14 = arith.select %12, %7, %13 : vector<8x16xi1>, vector<8x16xf32>
    %c0_5 = arith.constant 0 : index
    %c0_6 = arith.constant 0 : index
    %c0_7 = arith.constant 0 : index
    %15 = vector.load %arg3[%c0_5, %c0_6, %c0_7] : memref<1x8x16xf32, #tpu.memory_space<vmem>>, vector<1x8x16xf32>
    %16 = vector.shape_cast %15 : vector<1x8x16xf32> to vector<8x16xf32>
    %17 = vector.shape_cast %14 : vector<8x16xf32> to vector<1x8x16xf32>
    tpu.vector_store %arg3[%c0_5, %c0_6, %c0_7], %17 {strides = array<i32>} : memref<1x8x16xf32, #tpu.memory_space<vmem>>, vector<1x8x16xf32>,
    return
  }
  func.func @transform_0(%arg0: i32) -> (i32, i32, i32) {
    %c0_i32 = arith.constant 0 : i32
    %c0_i32_0 = arith.constant 0 : i32
    %c0_i32_1 = arith.constant 0 : i32
    return %arg0, %c0_i32, %c0_i32_0 : i32, i32, i32
  }
  func.func @transform_1(%arg0: i32) -> (i32, i32) {
    %c0_i32 = arith.constant 0 : i32
    %c0_i32_0 = arith.constant 0 : i32
    %c0_i32_1 = arith.constant 0 : i32
    return %c0_i32, %c0_i32_0 : i32, i32
  }
  func.func @transform_2(%arg0: i32) -> (i32, i32, i32) {
    %c0_i32 = arith.constant 0 : i32
    %c0_i32_0 = arith.constant 0 : i32
    %c0_i32_1 = arith.constant 0 : i32
    return %arg0, %c0_i32, %c0_i32_0 : i32, i32, i32
  }
}

</mosaic_0001>

<bundles_post_ra>
// kernel: tpu_custom_call.1
= control target key start
LH: loop header
LB: loop body
LE: loop exit
PB: predicated region body
PF: predicated region fallthrough
CT: control target
= control target key end

     0   :  { %7 = vsyncpa [#allocation3], 0  ;;  %s808_s0 = inlined_call_operand.hbm [shape: f32[2,4,20], index: 0, kind: input, shape index: {}]   ;;  %s809_s1 = inlined_call_operand.hbm [shape: f32[8,12], index: 1, kind: input, shape index: {}]   ;;  %s810_s2 = inlined_call_operand.hbm [shape: f32[2,8,16], index: 2, kind: output, shape index: {}]  }
   0x1   :  { %9 = vsyncpa [#allocation3 + $0x1], 0 }
   0x2   :  { %10 = vsyncpa [#allocation6], 0 }
   0x3   :  { %11 = vsyncpa [#allocation4], 0 }
   0x4   :  { %13 = vsyncpa [#allocation4 + $0x1], 0  ;;  %s606_s9 = smov 0   ;;  %s608_s10 = smov 0  }
   0x5   :  { %s610_s11 = smov 0   ;;  %s612_s12 = smov 0  }
   0x6 LB: > { %s627_s13 = sadd.s32 4294967295, %s580_s12   ;;  %s359_s14 = sadd.s32 4294967294, %s580_s12   ;;  %s580_s12 = sphi %s612_s12, %s834_s12   ;;  %s576_s11 = sphi %s610_s11, %s833_s11   ;;  %s572_s10 = sphi %s608_s10, %s832_s10   ;;  %s568_s9 = sphi %s606_s9, %s831_s9  }
   0x7   : > { %p39_p0 = scmp.ne.s32.totalorder %s572_s10, %s568_s9  ;;  %p811_p1 = scmp.eq.s32.totalorder %s627_s13, 0 }
   0x8   : > { %p90_p3 = scmp.eq.s32.totalorder %s359_s14, 1  ;;  %p360_p5 = scmp.ge.s32.totalorder %s580_s12, 1 }
   0x9   : > { %p636_p4 = por %p811_p1, %p39_p0  ;;  %p97_p7 = scmp.lt.s32.totalorder %s580_s12, 3 }
   0xa   : > { %p641_p6 = por %p90_p3, %p39_p0  ;;  %s582_s18 = smov [#allocation5]  }
   0xb   : > { %s814_s15 = scalar_select %p636_p4, 1, 0 }
   0xc   : > { %s815_s16 = scalar_select %p641_p6, 1, 0 }
   0xd   : > { %p646_p8 = pnand %p360_p5, %p97_p7  ;;  %s110_s19 = sshll.u32 %s582_s18, 4  ;;  %s111_s19 = int_to_ptr.vmem [resolvable:$true] %s110_s19 }
   0xe   : > { %s654_s20 = sadd.s32 1, %s580_s12   ;;  %s26_s24 = sadd.s32 1, %s576_s11 }
   0xf   : > { %s816_s17 = scalar_select %p646_p8, 1, 0 }
  0x10   : > { %p397_p10 = pneg %p646_p8  ;;  %s23_s22 = ssub.s32 %s580_s12, %s654_s20 }
  0x11   : > { %p664_p12 = scmp.eq.s32.totalorder %s23_s22, 0  ;;  %s452_s27 = scalar_lea.hbm %s809_s1, 128 }
  0x12   : > { %p658_p11 = pnand %p397_p10, %p811_p1  ;;  %p453_p0 = scmp.ne.s32.totalorder %s809_s1, %s452_s27 }
  0x13   : > { %s818_s23 = scalar_select %p664_p12, 1, 0 }
  0x14   : > { %p454_p3 = pneg %p658_p11  ;;  %p459_p10 = scmp.lt.u32.totalorder %s452_s27, %s809_s1 }
  0x16   : > { %p455_p5 = pnand %p454_p3, %p453_p0 }
  0x18   : > { %p456_p7 = pneg %p455_p5 }
  0x1a   : > { %p461_p9 = pnand %p459_p10, %p456_p7 }
  0x1c   : > { %464 = shalt.err (!%p461_p9)
}
  0x1d   : > { %s465_s4 = scalar_lea.vmem %s111_s19, 128  ;;  %p473_p6 = scmp.lt.s32.totalorder %s111_s19, %s111_s19 }
  0x1e   : > { %p466_p1 = scmp.ne.s32.totalorder %s111_s19, %s465_s4  ;;  %p474_p4 = scmp.lt.s32.totalorder %s465_s4, %s465_s4 }
  0x20   : > { %p468_p2 = pnand %p466_p1, %p454_p3  ;;  %p475_p8 = por %p474_p4, %p473_p6 }
  0x22   : > { %p469_p13 = pneg %p468_p2 }
  0x24   : > { %p476_p12 = pnand %p475_p8, %p469_p13 }
  0x26   : > { %479 = shalt.err (!%p476_p12)
}
  0x27   : > { %400 = dma.hbm_to_vmem [thread:$0]  (!%p658_p11), %s809_s1, 128, %s111_s19, [#allocation6]  }
  0x28   : > { %p819_p1 = scmp.ne.s32.totalorder %s818_s23, 0  ;;  %p34_p2 = scmp.eq.s32.totalorder %s580_s12, 0 }
  0x29   : > { %p820_p4 = scmp.ne.s32.totalorder %s576_s11, %s572_s10  ;;  %p821_p6 = scmp.eq.s32.totalorder %s627_s13, 1 }
  0x2a   : > { %s690_s7 = scalar_select %p819_p1, %s576_s11, %s26_s24  }
  0x2b   : > { %p698_p8 = por %p821_p6, %p820_p4  ;;  %p410_p9 = scmp.lt.s32.totalorder %s580_s12, 2 }
  0x2c   : > { %s121_s14 = sand.u32 1, %s576_s11   ;;  %p823_p12 = pmov %p820_p4 }
  0x2d   : > { %s363_s18 = sshll.u32 %s121_s14, 2  ;;  %s364_s21 = sshll.u32 %s580_s12, 6 }
  0x2e   : > { %p35_p13 = por %p34_p2, %p823_p12  ;;  %s711_s19 = scalar_lea.hbm %s808_s0, %s364_s21 }
  0x2f   : > { %s125_s23 = scalar_lea.vmem [#allocation2], %s363_s18  ;;  %s122_s27 = scalar_lea.sflag [#allocation3], %s121_s14 }
  0x30   : > { %s132_s24 = sshll.u32 %s125_s23, 4  ;;  %p713_p11 = pnand %p410_p9, %p35_p13  ;;  %s717_s24 = int_to_ptr.vmem [resolvable:$true] %s132_s24 }
  0x31   : > { %s480_s28 = scalar_lea.hbm %s711_s19, 64  ;;  %s485_s3 = scalar_lea.hbm %s808_s0, 128 }
  0x32   : > { %p481_p0 = scmp.ne.s32.totalorder %s711_s19, %s480_s28  ;;  %p482_p3 = pneg %p713_p11 }
  0x33   : > { %p486_p10 = scmp.lt.u32.totalorder %s711_s19, %s808_s0  ;;  %p487_p1 = scmp.lt.u32.totalorder %s485_s3, %s480_s28 }
  0x34   : > { %p483_p5 = pnand %p482_p3, %p481_p0  ;;  %p489_p4 = scmp.lt.u32.totalorder %s480_s28, %s711_s19 }
  0x35   : > { %p488_p2 = por %p487_p1, %p486_p10 }
  0x36   : > { %p484_p7 = pneg %p483_p5 }
  0x37   : > { %p490_p6 = por %p489_p4, %p488_p2 }
  0x39   : > { %p491_p9 = pnand %p490_p6, %p484_p7 }
  0x3b   : > { %494 = shalt.err (!%p491_p9)
}
  0x3c   : > { %s495_s6 = scalar_lea.vmem %s717_s24, 64  ;;  %s583_s14 = smov [#allocation2]  }
  0x3d   : > { %p496_p12 = scmp.ne.s32.totalorder %s717_s24, %s495_s6  ;;  %s500_s18 = sshll.u32 %s583_s14, 4  ;;  %s501_s18 = int_to_ptr.vmem [resolvable:$false] %s500_s18 }
  0x3e   : > { %s502_s21 = scalar_lea.vmem %s501_s18, 128  ;;  %p503_p5 = scmp.lt.s32.totalorder %s717_s24, %s501_s18 }
  0x3f   : > { %p498_p13 = pnand %p496_p12, %p482_p3  ;;  %p504_p10 = scmp.lt.s32.totalorder %s502_s21, %s495_s6 }
  0x41   : > { %p499_p0 = pneg %p498_p13  ;;  %p505_p1 = por %p504_p10, %p503_p5 }
  0x43   : > { %p506_p2 = pnand %p505_p1, %p499_p0 }
  0x45   : > { %509 = shalt.err (!%p506_p2)
}
  0x46   : > { %404 = dma.hbm_to_vmem [thread:$0]  (!%p713_p11), %s711_s19, 64, %s717_s24, %s122_s27  }
  0x47   : > { %p825_p7 = scmp.ne.s32.totalorder %s816_s17, 0 }
  0x48   : > { %s747_s22 = sand.u32 (!%p825_p7), 1, %s572_s10   ;;  %p826_p3 = scmp.ne.s32.totalorder (!%p825_p7), %s814_s15, 0 }
  0x49   : > { %141 = sbr.rel (%p825_p7) target bundleno = 438 (0x1b6), region = 28  ;;  %s366_s25 = sshll.u32 (!%p825_p7), %s747_s22, 2 }
  0x4a   : > { %s144_s23 = scalar_lea.sflag (!%p825_p7), [#allocation3], %s747_s22  ;;  %s147_s28 = scalar_lea.vmem (!%p825_p7), [#allocation2], %s366_s25 }
  0x50   : > { %555 = dma.done.wait (%p826_p3), %s144_s23, 64  }
  0x51   : > { %557 = vsyncadd (%p826_p3), %s144_s23, 4294967232  ;;  %p827_p4 = scmp.eq.s32.totalorder %s627_s13, 0 }
  0x53   : > { %559 = dma.done.wait (%p827_p4), [#allocation6], 128   ;;  %p828_p11 = pmov %p827_p4 }
  0x54   : > { %v584_v0 = vmov 0.0|0.0   ;;  %vm585_vm0 = vmmov 0   ;;  %v586_v1 = vmov 0.0   ;;  %v172_v2 = vld [vmem:[%s147_s28] sm:$0xf]  ;;  %s587_s17 = smov 126   ;;  %v259_v9 = vlaneseq }
  0x55   : > { %561 = vsyncadd (%p828_p11), [#allocation6], 4294967168  ;;  %385 = vmatprep.subr.bf16.mxu0 %v584_v0  ;;  %382 = vmatprep.mubr.msk.f32.mxu0 %vm585_vm0, %v586_v1  ;;  %v174_v3 = vrot.slane %v172_v2, 4  ;;  %s588_s19 = smov 124   ;;  %vm180_vm1 = vcmask 1043456   ;;  %vm589_vm2 = vmmov 1  }
  0x56   : > { %vm387_vm3 = vmpackc.low %vm180_vm1, %vm589_vm2  ;;  %v182_v8 = vld [vmem:[#allocation5] sm:$0xff]  ;;  %vm183_vm4 = vcmask 97280   ;;  %s368_s15 = sshll.u32 %s747_s22, 3  ;;  %v260_v10 = vand.u32 127, %v259_v9  ;;  %s372_s24 = sshll.u32 %s627_s13, 7  ;;  %vm263_vm6 = vcmask 130048  }
  0x57   : > { %175 = vrot.lane.b32.xlu0 %v174_v3, %s587_s17  ;;  %s171_s26 = scalar_lea.vmem [#allocation7], %s368_s15  ;;  %s764_s3 = scalar_lea.hbm %s810_s2, %s372_s24 }
  0x58   : > { %s279_s27 = sshll.u32 %s171_s26, 4  ;;  %vm261_vm5 = vcmp.ge.s32.totalorder %v260_v10, 4  ;;  %s266_s4 = scalar_lea.sflag [#allocation4], %s747_s22  ;;  %s766_s27 = int_to_ptr.vmem [resolvable:$true] %s279_s27 }
  0x59   : > { %s510_s13 = scalar_lea.vmem %s766_s27, 128  ;;  %s590_s5 = smov [#allocation7]  }
  0x5a   : > { %p511_p6 = scmp.ne.s32.totalorder %s766_s27, %s510_s13  ;;  %s514_s6 = sshll.u32 %s590_s5, 4  ;;  %s515_s6 = int_to_ptr.vmem [resolvable:$false] %s514_s6 }
  0x5b   : > { %178 = vrot.lane.b32.xlu0 %v172_v2, %s588_s19  ;;  %s516_s14 = scalar_lea.vmem %s515_s6, 256  ;;  %p517_p13 = scmp.lt.s32.totalorder %s766_s27, %s515_s6 }
  0x5c   : > { %p512_p9 = pnand %p511_p6, %p698_p8  ;;  %p518_p0 = scmp.lt.s32.totalorder %s516_s14, %s510_s13 }
  0x5e   : > { %p513_p12 = pneg %p512_p9  ;;  %p519_p5 = por %p518_p0, %p517_p13 }
  0x60   : > { %p520_p10 = pnand %p519_p5, %p513_p12 }
  0xc9   : > { %v176_v4 = vpop.permute.xlu0 %175 }
  0xca   : > { %v181_v5 = vsel %vm180_vm1, %v172_v2, %v176_v4 }
  0xcd   : > { %v179_v6 = vpop.permute.xlu0 %178 }
  0xce   : > { %v386_v7 = vpack.c.bf16 %v179_v6, %v181_v5 }
  0xd0   : > { %388 = vmatpush3.bf16.msk.msra.mxu0 %vm387_vm3, %v386_v7 }
  0xd3   : > { %383 = vmatmul.mubr.msk.f32.vlgmr.msra.gmra.mrb[0].mxu0 %vm183_vm4, %v182_v8 }
 0x1a6   : > { %v255_v11 = vpop.f32.mrb[0].mxu0 }
 0x1a7   : > { %v262_v12 = vsel %vm261_vm5, %v255_v11, 0.0  ;;  %v384_v13 = vpop.f32.mrb[1].mxu0 }
 0x1a8   : > { %264 = vst.msk [vmem:[%s171_s26] sm:$0xff] %vm263_vm6, %v262_v12 }
 0x1a9   : > { %523 = shalt.err (!%p520_p10)
}
 0x1aa   : > { %s524_s18 = scalar_lea.hbm %s764_s3, 128  ;;  %s528_s25 = scalar_lea.hbm %s810_s2, 256 }
 0x1ab   : > { %p525_p1 = scmp.ne.s32.totalorder %s764_s3, %s524_s18  ;;  %p529_p3 = scmp.lt.u32.totalorder %s764_s3, %s810_s2 }
 0x1ac   : > { %p530_p4 = scmp.lt.u32.totalorder %s528_s25, %s524_s18  ;;  %p532_p6 = scmp.lt.u32.totalorder %s524_s18, %s764_s3 }
 0x1ad   : > { %p526_p2 = pnand %p525_p1, %p698_p8 }
 0x1ae   : > { %p531_p11 = por %p530_p4, %p529_p3 }
 0x1af   : > { %p527_p7 = pneg %p526_p2 }
 0x1b0   : > { %p533_p9 = por %p532_p6, %p531_p11 }
 0x1b2   : > { %p534_p12 = pnand %p533_p9, %p527_p7 }
 0x1b4   : > { %537 = shalt.err (!%p534_p12)
}
 0x1b5   : > { %395 = dma.vmem_to_hbm [thread:$0]  (%p698_p8), %s766_s27, 128, %s764_s3, %s266_s4  }
 0x1b6 PF: > { %s291_s17 = sand.u32 1, %s568_s9   ;;  %p829_p13 = scmp.ne.s32.totalorder %s815_s16, 0 }
 0x1b7   : > { %p830_p0 = scmp.ge.s32.totalorder %s580_s12, 2  ;;  %s292_s19 = scalar_lea.sflag [#allocation4], %s291_s17 }
 0x1b9   : > { %p406_p5 = pnand %p830_p0, %p829_p13 }
 0x1bb   : > { %563 = dma.done.wait (!%p406_p5), %s292_s19, 128  }
 0x1bc   : > { %565 = vsyncadd (!%p406_p5), %s292_s19, 4294967168  ;;  %p16_p10 = scmp.ge.s32.totalorder %s654_s20, 4   ;;  %s831_s9 = smov %s572_s10 }
 0x1bd   : > { %s832_s10 = smov %s576_s11  ;;  %s833_s11 = smov %s690_s7 }
 0x1be   : > { %s834_s12 = smov %s654_s20  ;;  %18 = sbr.rel (!%p16_p10) target bundleno = 6 (0x6), region = 77 }
 0x1c5   :  { %297 = vsyncpa [#allocation3], 1 }
 0x1c6   :  { %299 = vsyncpa [#allocation3 + $0x1], 1 }
 0x1c7   :  { %300 = vsyncpa [#allocation6], 1 }
 0x1c8   :  { %301 = vsyncpa [#allocation4], 1 }
 0x1c9   :  { %303 = vsyncpa [#allocation4 + $0x1], 1 }

</bundles_post_ra>
